<compile_context>
chip_gen: v7x
topology: tpu7x:2x2x1
jax: 0.10.0
libtpu: 0.0.40
codegen_flags: <defaults>
</compile_context>

<pallas_src>
import jax
import jax.numpy as jnp
from jax.experimental import pallas as pl
from jax.experimental.pallas import tpu as pltpu

_CUBIC_A = -0.75  # PyTorch bicubic coefficient


def _cubic_weight(t):
    a = _CUBIC_A
    at = jnp.abs(t)
    w1 = ((a + 2.0) * at - (a + 3.0)) * at * at + 1.0          # |t| <= 1
    w2 = (((at - 5.0) * at + 8.0) * at - 4.0) * a              # 1 < |t| < 2
    return jnp.where(at <= 1.0, w1, jnp.where(at < 2.0, w2, 0.0))


def build_time_warp_matrix(key, t, window):
    """Returns (W, row_lo, row_hi) with W @ x == espnet time_warp(x, window) along time.

    W is (T, T) with at most 4 nonzeros per row (bicubic taps).  row_lo/row_hi (int32,
    (T,)) are the first/last nonzero column per row; the kernel uses them to skip
    all-zero contraction tiles.  Returns None when the torch code returns x unchanged.
    """
    if t - window <= window:
        return None
    kc, kw = jax.random.split(key)
    center = jax.random.randint(kc, (), window, t - window)
    warped = jax.random.randint(kw, (), center - window, center + window) + 1

    j = jnp.arange(t, dtype=jnp.int32)
    is_left = j < warped
    in_len = jnp.where(is_left, center, t - center)            # source segment length
    out_len = jnp.where(is_left, warped, t - warped)           # target segment length
    offset = jnp.where(is_left, 0, center)                     # source segment offset
    jj = jnp.where(is_left, j, j - warped)                     # index within target segment

    scale = in_len.astype(jnp.float32) / out_len.astype(jnp.float32)
    src = (jj.astype(jnp.float32) + 0.5) * scale - 0.5          # align_corners=False
    t0 = jnp.floor(src)
    frac = src - t0

    k = jnp.arange(4, dtype=jnp.int32)
    w = _cubic_weight(frac[:, None] + 1.0 - k[None, :].astype(jnp.float32))   # (T, 4)
    cols = t0.astype(jnp.int32)[:, None] - 1 + k[None, :]
    cols = jnp.clip(cols, 0, (in_len - 1)[:, None]) + offset[:, None]          # border replicate
    warp_w = jnp.zeros((t, t), jnp.float32).at[j[:, None], cols].add(w)        # (T, T)
    return warp_w, cols.min(axis=1).astype(jnp.int32), cols.max(axis=1).astype(jnp.int32)


def sample_mask_params(key, batch, dim_size, width_range, num_mask):
    """Matches espnet MaskAlongAxis sampling (torch.randint semantics, JAX RNG)."""
    k_len, k_pos = jax.random.split(key)
    mask_len = jax.random.randint(k_len, (batch, num_mask),
                                  width_range[0], width_range[1], dtype=jnp.int32)
    max_len = jnp.max(mask_len)
    mask_pos = jax.random.randint(k_pos, (batch, num_mask), 0,
                                  jnp.maximum(1, dim_size - max_len), dtype=jnp.int32)
    return mask_pos, mask_len


# ----------------------------------------------------------------------------------------
# Kernels.
#   warp kernel : K-tiled  acc += W(tm,tk) @ Xs(tk,BNp)  on the lane-dense (T, B*F) slab,
#                 skipping K-tiles outside the per-stripe nonzero band [klo[i], khi[i]];
#                 finalize: O = acc * (rowkeep @ expand)  (keep is exactly 0/1 in f32).
#   mask kernel : native (B, T, F) layout, O = x * keep_t[b,t] * keep_f[b,f]  (one pass).
# ----------------------------------------------------------------------------------------
def _specaug_warp_kernel(klo_ref, khi_ref, w_ref, xs_ref, rk_ref, ex_ref, o_ref, acc_ref):
    i = pl.program_id(0)
    k = pl.program_id(1)

    @pl.when(k == 0)
    def _init():
        acc_ref[...] = jnp.zeros_like(acc_ref)

    @pl.when(jnp.logical_and(k >= klo_ref[i], k <= khi_ref[i]))
    def _accumulate():
        acc_ref[...] += jnp.dot(w_ref[...], xs_ref[...],
                                preferred_element_type=jnp.float32)

    @pl.when(k == pl.num_programs(1) - 1)
    def _finalize():
        keep = jnp.dot(rk_ref[...], ex_ref[...], preferred_element_type=jnp.float32)
        o_ref[...] = (acc_ref[...] * keep).astype(o_ref.dtype)


def _specaug_mask_kernel(x_ref, rk_ref, ck_ref, o_ref):
    o_ref[...] = (x_ref[...].astype(jnp.float32) * rk_ref[...] * ck_ref[...]
                  ).astype(o_ref.dtype)


# ----------------------------------------------------------------------------------------
# Wrapper helpers.
# ----------------------------------------------------------------------------------------
def _round_up(v, m):
    return ((v + m - 1) // m) * m


def _vmem_cap_bytes():
    try:
        return int(0.85 * pltpu.get_tpu_info().vmem_capacity_bytes)
    except Exception:  # conservative fallback (v7x has 64 MiB per TensorCore)
        return 48 << 20


def _choose_row_tile(t, row_block):
    if t <= 8:
        return t
    half = _round_up((t + 1) // 2, 8)     # guarantee >= 2 row stripes for 2-TC chips
    return max(8, min(row_block, half))


def specaug_apply(x, warp, t_pos, t_len, f_pos, f_len, *, row_block=512, k_block=512):
    """x: (B, T, F). warp: result of build_time_warp_matrix (or None).

    Mask params: (B, num_mask) int32 each. t_* mask axis T, f_* mask axis F.
    """
    b, t, f = x.shape
    out_dtype = x.dtype
    itemsize = jnp.dtype(out_dtype).itemsize

    # per-batch keep factors along T and along F (O(B*(T+F)) wrapper work)
    ar_t = jnp.arange(t, dtype=jnp.int32)[None, None, :]
    masked_t = jnp.any((t_pos[:, :, None] <= ar_t) & (ar_t < (t_pos + t_len)[:, :, None]),
                       axis=1)                                                   # (B, T)
    ar_f = jnp.arange(f, dtype=jnp.int32)[None, None, :]
    masked_f = jnp.any((f_pos[:, :, None] <= ar_f) & (ar_f < (f_pos + f_len)[:, :, None]),
                       axis=1)                                                   # (B, F)
    keep_t = ~masked_t
    keep_f = ~masked_f

    vmem_cap = _vmem_cap_bytes()

    # ------------------------------------------------------------------ mask-only path --
    if warp is None:
        # Native (B, T, F) layout: one HBM read + one write, no transpose round trips.
        tt = t if t <= 1024 else 1024
        if b == 1 and t > 8:
            tt = min(tt, _round_up((t + 1) // 2, 8))   # keep >=2 grid steps for 2-TC chips
        nj = pl.cdiv(t, tt)
        rk3 = keep_t.astype(jnp.float32)[:, :, None]    # (B, T, 1)
        ck3 = keep_f.astype(jnp.float32)[:, None, :]    # (B, 1, F)

        blk = 4 * tt * f * itemsize + 2 * tt * 4 + 2 * f * 4
        vmem_limit = int(min(vmem_cap, max(blk + (4 << 20), 32 << 20)))
        cost = pl.CostEstimate(flops=2 * b * t * f, transcendentals=0,
                               bytes_accessed=2 * b * t * f * itemsize + b * (t + f) * 4)
        return pl.pallas_call(
            _specaug_mask_kernel,
            out_shape=jax.ShapeDtypeStruct((b, t, f), out_dtype),
            grid=(b, nj),
            in_specs=[
                pl.BlockSpec((1, tt, f), lambda bi, ji: (bi, ji, 0)),
                pl.BlockSpec((1, tt, 1), lambda bi, ji: (bi, ji, 0)),
                pl.BlockSpec((1, 1, f), lambda bi, ji: (bi, 0, 0)),
            ],
            out_specs=pl.BlockSpec((1, tt, f), lambda bi, ji: (bi, ji, 0)),
            compiler_params=pltpu.CompilerParams(
                dimension_semantics=("parallel", "parallel"),
                vmem_limit_bytes=vmem_limit),
            cost_estimate=cost,
        )(x, rk3, ck3)

    # ---------------------------------------------------------------------- warp path ---
    warp_w, row_lo, row_hi = warp
    bn = b * f
    bnp = _round_up(bn, 128)            # lane-dense output slab: no masked vst
    bp = _round_up(b, 16)               # bf16 sublane packing for the tiny keep dot

    tm = _choose_row_tile(t, row_block)
    k_block = max(128, (k_block // 128) * 128)
    tk = t if t <= k_block else k_block  # multiple of 128 whenever it splits T
    tkp = _round_up(t, tk)
    ni, nk = pl.cdiv(t, tm), tkp // tk

    # zero-padded bf16 operands (zero-padding the contraction axis keeps padded K-tiles
    # exact; row padding only feeds output rows whose writes Pallas masks out).
    xs = jnp.zeros((tkp, bnp), jnp.bfloat16).at[:t, :bn].set(
        jnp.transpose(x, (1, 0, 2)).reshape(t, bn).astype(jnp.bfloat16))
    w_bf = warp_w.astype(jnp.bfloat16)
    if tkp > t:
        w_bf = jnp.zeros((t, tkp), jnp.bfloat16).at[:, :t].set(w_bf)

    rowkeep = jnp.zeros((t, bp), jnp.bfloat16).at[:, :b].set(keep_t.astype(jnp.bfloat16).T)
    # expand[b', b*F + f'] = keep_f[b, f'] if b' == b else 0
    expand = jnp.zeros((bp, bnp), jnp.bfloat16).at[:b, :bn].set(
        (jnp.eye(b, dtype=jnp.bfloat16)[:, :, None]
         * keep_f.astype(jnp.bfloat16)[None, :, :]).reshape(b, bn))

    # per-row-stripe band of nonzero K-tiles (W has <= 4 nonzeros/row, contiguous band per
    # stripe).  Scalar-prefetched so the kernel skips all-zero K-tiles (pl.when) and their
    # W/xs DMAs (index_map clamps into the band -> out-of-band block indices dedupe).
    pad_rows = ni * tm - t
    if pad_rows:
        row_lo = jnp.concatenate([row_lo, jnp.full((pad_rows,), t - 1, jnp.int32)])
        row_hi = jnp.concatenate([row_hi, jnp.zeros((pad_rows,), jnp.int32)])
    klo = (row_lo.reshape(ni, tm).min(axis=1) // tk).astype(jnp.int32)
    khi = (row_hi.reshape(ni, tm).max(axis=1) // tk).astype(jnp.int32)

    def w_map(i, k, klo_ref, khi_ref):
        return (i, jnp.clip(k, klo_ref[i], khi_ref[i]))

    def xs_map(i, k, klo_ref, khi_ref):
        return (jnp.clip(k, klo_ref[i], khi_ref[i]), 0)

    blk = (2 * tm * tk * 2 + 2 * tk * bnp * 2 + 2 * tm * bp * 2 + 2 * bp * bnp * 2
           + 2 * tm * bnp * itemsize + tm * bnp * 4)
    vmem_limit = int(min(vmem_cap, max(blk + (4 << 20), 32 << 20)))
    cost = pl.CostEstimate(
        flops=2 * t * tkp * bnp + 2 * ni * tm * bp * bnp,
        transcendentals=0,
        bytes_accessed=int(w_bf.size * 2 + xs.size * 2 + rowkeep.size * 2
                           + expand.size * 2 + t * bnp * itemsize))

    out_slab = pl.pallas_call(
        _specaug_warp_kernel,
        out_shape=jax.ShapeDtypeStruct((t, bnp), out_dtype),
        grid_spec=pltpu.PrefetchScalarGridSpec(
            num_scalar_prefetch=2,
            grid=(ni, nk),
            in_specs=[
                pl.BlockSpec((tm, tk), w_map),
                pl.BlockSpec((tk, bnp), xs_map),
                pl.BlockSpec((tm, bp), lambda i, k, klo_ref, khi_ref: (i, 0)),
                pl.BlockSpec((bp, bnp), lambda i, k, klo_ref, khi_ref: (0, 0)),
            ],
            out_specs=pl.BlockSpec((tm, bnp), lambda i, k, klo_ref, khi_ref: (i, 0)),
            scratch_shapes=[pltpu.VMEM((tm, bnp), jnp.float32)]),
        compiler_params=pltpu.CompilerParams(
            dimension_semantics=("parallel", "arbitrary"),
            vmem_limit_bytes=vmem_limit),
        cost_estimate=cost,
    )(klo, khi, w_bf, xs, rowkeep, expand)

    # TODO(synk): if the surrounding model can consume the (T, B*F) slab layout directly,
    # drop this transpose-back (and the slab build above) to save an HBM round trip.
    return jnp.transpose(out_slab[:, :bn].reshape(t, b, f), (1, 0, 2))


def specaug_forward(x, x_lengths, key, *,
                    apply_time_warp=True, time_warp_window=5,
                    apply_freq_mask=True, freq_mask_width_range=(0, 20), num_freq_mask=2,
                    apply_time_mask=True, time_mask_width_range=(0, 10), num_time_mask=2):
    """Mirrors SpecAug.forward; returns (augmented_x, x_lengths)."""
    b, t, f = x.shape
    k_warp, k_freq, k_time = jax.random.split(key, 3)
    warp = build_time_warp_matrix(k_warp, t, time_warp_window) if apply_time_warp else None
    if apply_freq_mask:
        # module transposes (1,2) before MaskAlongAxis(dim="freq") -> masked axis is T
        t_pos, t_len = sample_mask_params(k_freq, b, t, freq_mask_width_range, num_freq_mask)
    else:
        t_pos = jnp.zeros((b, 1), jnp.int32); t_len = jnp.zeros((b, 1), jnp.int32)
    if apply_time_mask:
        # module transposes (1,2) before MaskAlongAxis(dim="time") -> masked axis is F
        f_pos, f_len = sample_mask_params(k_time, b, f, time_mask_width_range, num_time_mask)
    else:
        f_pos = jnp.zeros((b, 1), jnp.int32); f_len = jnp.zeros((b, 1), jnp.int32)
    out = specaug_apply(x, warp, t_pos, t_len, f_pos, f_len)
    return out, x_lengths


def _reference(x, warp, t_pos, t_len, f_pos, f_len):
    """Pure-JAX reference (uses the same bf16-rounded operands for the warp)."""
    b, t, f = x.shape
    if warp is not None:
        wb = warp[0].astype(jnp.bfloat16).astype(jnp.float32)
        xb = x.astype(jnp.bfloat16).astype(jnp.float32)
        y = jnp.einsum("tu,buf->btf", wb, xb)
    else:
        y = x.astype(jnp.float32)
    ar_t = jnp.arange(t)[None, None, :]
    m_t = jnp.any((t_pos[:, :, None] <= ar_t) & (ar_t < (t_pos + t_len)[:, :, None]), axis=1)
    ar_f = jnp.arange(f)[None, None, :]
    m_f = jnp.any((f_pos[:, :, None] <= ar_f) & (ar_f < (f_pos + f_len)[:, :, None]), axis=1)
    full = m_t[:, :, None] | m_f[:, None, :]
    return jnp.where(full, 0.0, y).astype(x.dtype)


if __name__ == "__main__":
    key = jax.random.PRNGKey(0)
    k_data, k_aug, k_data2, k_aug2 = jax.random.split(key, 4)

    # --- test 1: toy shape (B=2, T=16, F=32): warped path + mask-only fast path ---------
    B, T, F = 2, 16, 32
    x = jax.random.normal(k_data, (B, T, F), dtype=jnp.float32)
    x_lengths = jnp.full((B,), T, dtype=jnp.int32)

    kw, kf, kt = jax.random.split(k_aug, 3)
    warp = build_time_warp_matrix(kw, T, 5)
    t_pos, t_len = sample_mask_params(kf, B, T, (0, 8), 2)     # freq_mask_width_range -> T
    f_pos, f_len = sample_mask_params(kt, B, F, (0, 10), 2)    # time_mask_width_range -> F

    out = jax.block_until_ready(specaug_apply(x, warp, t_pos, t_len, f_pos, f_len))
    ref = _reference(x, warp, t_pos, t_len, f_pos, f_len)
    assert out.shape == x.shape and out.dtype == x.dtype
    assert jnp.allclose(out, ref, atol=1e-2, rtol=1e-2), float(jnp.max(jnp.abs(out - ref)))

    # no-warp fast path (masking only; native layout, full-precision, exact)
    out_nw = jax.block_until_ready(specaug_apply(x, None, t_pos, t_len, f_pos, f_len))
    ref_nw = _reference(x, None, t_pos, t_len, f_pos, f_len)
    assert jnp.allclose(out_nw, ref_nw, atol=1e-6), float(jnp.max(jnp.abs(out_nw - ref_nw)))

    # --- test 2: non-divisible T + split contraction axis (K-tiling, band skip, padding) -
    B2, T2, F2 = 2, 150, 16
    x2 = jax.random.normal(k_data2, (B2, T2, F2), dtype=jnp.float32)
    kw2, kf2, kt2 = jax.random.split(k_aug2, 3)
    warp2 = build_time_warp_matrix(kw2, T2, 5)
    t_pos2, t_len2 = sample_mask_params(kf2, B2, T2, (0, 20), 2)
    f_pos2, f_len2 = sample_mask_params(kt2, B2, F2, (0, 10), 2)
    out2 = jax.block_until_ready(
        specaug_apply(x2, warp2, t_pos2, t_len2, f_pos2, f_len2, row_block=32, k_block=128))
    ref2 = _reference(x2, warp2, t_pos2, t_len2, f_pos2, f_len2)
    assert jnp.allclose(out2, ref2, atol=1e-2, rtol=1e-2), float(jnp.max(jnp.abs(out2 - ref2)))

    # --- full SpecAug.forward-style call (lengths pass through unchanged) ----------------
    out3, out_lengths = specaug_forward(x, x_lengths, key=jax.random.PRNGKey(1))
    jax.block_until_ready(out3)
    assert out_lengths is x_lengths

    print("KERNEL_OK")
</pallas_src>

<mosaic_0001>
module attributes {stable_mosaic.version = 11 : i64} {
  func.func @_specaug_warp_kernel(%arg0: i32, %arg1: i32, %arg2: memref<2xi32, #tpu.memory_space<smem>>, %arg3: memref<2xi32, #tpu.memory_space<smem>>, %arg4: memref<8x16xbf16, #tpu.memory_space<vmem>>, %arg5: memref<16x128xbf16, #tpu.memory_space<vmem>>, %arg6: memref<8x16xbf16, #tpu.memory_space<vmem>>, %arg7: memref<16x128xbf16, #tpu.memory_space<vmem>>, %arg8: memref<8x128xf32, #tpu.memory_space<vmem>>, %arg9: memref<8x128xf32, #tpu.memory_space<vmem>>) attributes {dimension_semantics = [#tpu.dimension_semantics<parallel>, #tpu.dimension_semantics<arbitrary>], iteration_bounds = array<i64: 2, 1>, scalar_prefetch = 2 : i64, scratch_operands = 1 : i64, tpu.core_type = #tpu.core_type<tc>, window_params = [{transform_indices = @transform_0, window_bounds = array<i64: 8, 16>}, {transform_indices = @transform_1, window_bounds = array<i64: 16, 128>}, {transform_indices = @transform_2, window_bounds = array<i64: 8, 16>}, {pipeline_mode = #tpu.pipeline_mode<synchronous>, transform_indices = @transform_3, window_bounds = array<i64: 16, 128>}, {transform_indices = @transform_4, window_bounds = array<i64: 8, 128>}]} {
    %c0_i32 = arith.constant 0 : i32
    %0 = arith.cmpi eq, %arg1, %c0_i32 : i32
    %1 = arith.extui %0 : i1 to i32
    %c0_i32_0 = arith.constant 0 : i32
    %2 = arith.cmpi ne, %1, %c0_i32_0 : i32
    scf.if %2 {
      %cst = arith.constant 0.000000e+00 : f32
      %15 = vector.broadcast %cst : f32 to vector<8x128xf32>
      %c0 = arith.constant 0 : index
      %c0_4 = arith.constant 0 : index
      %16 = vector.load %arg9[%c0, %c0_4] : memref<8x128xf32, #tpu.memory_space<vmem>>, vector<8x128xf32>
      tpu.vector_store %arg9[%c0, %c0_4], %15 {strides = array<i32>} : memref<8x128xf32, #tpu.memory_space<vmem>>, vector<8x128xf32>,
    } else {
    }
    %3 = arith.index_cast %arg0 : i32 to index
    %4 = memref.load %arg2[%3] : memref<2xi32, #tpu.memory_space<smem>>
    %5 = arith.cmpi sge, %arg1, %4 : i32
    %6 = arith.index_cast %arg0 : i32 to index
    %7 = memref.load %arg3[%6] : memref<2xi32, #tpu.memory_space<smem>>
    %8 = arith.cmpi sle, %arg1, %7 : i32
    %9 = arith.andi %5, %8 : i1
    %10 = arith.extui %9 : i1 to i32
    %c0_i32_1 = arith.constant 0 : i32
    %11 = arith.cmpi ne, %10, %c0_i32_1 : i32
    scf.if %11 {
      %c0 = arith.constant 0 : index
      %c0_4 = arith.constant 0 : index
      %15 = vector.load %arg9[%c0, %c0_4] : memref<8x128xf32, #tpu.memory_space<vmem>>, vector<8x128xf32>
      %c0_5 = arith.constant 0 : index
      %c0_6 = arith.constant 0 : index
      %16 = vector.load %arg4[%c0_5, %c0_6] : memref<8x16xbf16, #tpu.memory_space<vmem>>, vector<8x16xbf16>
      %c0_7 = arith.constant 0 : index
      %c0_8 = arith.constant 0 : index
      %17 = vector.load %arg5[%c0_7, %c0_8] : memref<16x128xbf16, #tpu.memory_space<vmem>>, vector<16x128xbf16>
      %cst = arith.constant dense<0.000000e+00> : vector<8x128xf32>
      %18 = tpu.matmul %16, %17, %cst {dimension_numbers = #tpu.dot_dimension_numbers<[1], [0], [0], [1], [0, 0, 1, 1], [], []>} : vector<8x16xbf16>, vector<16x128xbf16>, vector<8x128xf32> -> vector<8x128xf32>
      %19 = arith.addf %15, %18 : vector<8x128xf32>
      %c0_9 = arith.constant 0 : index
      %c0_10 = arith.constant 0 : index
      %20 = vector.load %arg9[%c0_9, %c0_10] : memref<8x128xf32, #tpu.memory_space<vmem>>, vector<8x128xf32>
      tpu.vector_store %arg9[%c0_9, %c0_10], %19 {strides = array<i32>} : memref<8x128xf32, #tpu.memory_space<vmem>>, vector<8x128xf32>,
    } else {
    }
    %c0_i32_2 = arith.constant 0 : i32
    %12 = arith.cmpi eq, %arg1, %c0_i32_2 : i32
    %13 = arith.extui %12 : i1 to i32
    %c0_i32_3 = arith.constant 0 : i32
    %14 = arith.cmpi ne, %13, %c0_i32_3 : i32
    scf.if %14 {
      %c0 = arith.constant 0 : index
      %c0_4 = arith.constant 0 : index
      %15 = vector.load %arg6[%c0, %c0_4] : memref<8x16xbf16, #tpu.memory_space<vmem>>, vector<8x16xbf16>
      %c0_5 = arith.constant 0 : index
      %c0_6 = arith.constant 0 : index
      %16 = vector.load %arg7[%c0_5, %c0_6] : memref<16x128xbf16, #tpu.memory_space<vmem>>, vector<16x128xbf16>
      %cst = arith.constant dense<0.000000e+00> : vector<8x128xf32>
      %17 = tpu.matmul %15, %16, %cst {dimension_numbers = #tpu.dot_dimension_numbers<[1], [0], [0], [1], [0, 0, 1, 1], [], []>} : vector<8x16xbf16>, vector<16x128xbf16>, vector<8x128xf32> -> vector<8x128xf32>
      %c0_7 = arith.constant 0 : index
      %c0_8 = arith.constant 0 : index
      %18 = vector.load %arg9[%c0_7, %c0_8] : memref<8x128xf32, #tpu.memory_space<vmem>>, vector<8x128xf32>
      %19 = arith.mulf %18, %17 : vector<8x128xf32>
      %c0_9 = arith.constant 0 : index
      %c0_10 = arith.constant 0 : index
      %20 = vector.load %arg8[%c0_9, %c0_10] : memref<8x128xf32, #tpu.memory_space<vmem>>, vector<8x128xf32>
      tpu.vector_store %arg8[%c0_9, %c0_10], %19 {strides = array<i32>} : memref<8x128xf32, #tpu.memory_space<vmem>>, vector<8x128xf32>,
    } else {
    }
    return
  }
  func.func @transform_0(%arg0: i32, %arg1: i32, %arg2: memref<2xi32, #tpu.memory_space<smem>>, %arg3: memref<2xi32, #tpu.memory_space<smem>>) -> (i32, i32) {
    %0 = arith.index_cast %arg0 : i32 to index
    %1 = memref.load %arg2[%0] : memref<2xi32, #tpu.memory_space<smem>>
    %2 = arith.index_cast %arg0 : i32 to index
    %3 = memref.load %arg3[%2] : memref<2xi32, #tpu.memory_space<smem>>
    %4 = arith.maxsi %1, %arg1 : i32
    %5 = arith.minsi %3, %4 : i32
    %c0_i32 = arith.constant 0 : i32
    return %arg0, %5 : i32, i32
  }
  func.func @transform_1(%arg0: i32, %arg1: i32, %arg2: memref<2xi32, #tpu.memory_space<smem>>, %arg3: memref<2xi32, #tpu.memory_space<smem>>) -> (i32, i32) {
    %0 = arith.index_cast %arg0 : i32 to index
    %1 = memref.load %arg2[%0] : memref<2xi32, #tpu.memory_space<smem>>
    %2 = arith.index_cast %arg0 : i32 to index
    %3 = memref.load %arg3[%2] : memref<2xi32, #tpu.memory_space<smem>>
    %4 = arith.maxsi %1, %arg1 : i32
    %5 = arith.minsi %3, %4 : i32
    %c0_i32 = arith.constant 0 : i32
    %c0_i32_0 = arith.constant 0 : i32
    return %5, %c0_i32 : i32, i32
  }
  func.func @transform_2(%arg0: i32, %arg1: i32, %arg2: memref<2xi32, #tpu.memory_space<smem>>, %arg3: memref<2xi32, #tpu.memory_space<smem>>) -> (i32, i32) {
    %c0_i32 = arith.constant 0 : i32
    %c0_i32_0 = arith.constant 0 : i32
    return %arg0, %c0_i32 : i32, i32
  }
  func.func @transform_3(%arg0: i32, %arg1: i32, %arg2: memref<2xi32, #tpu.memory_space<smem>>, %arg3: memref<2xi32, #tpu.memory_space<smem>>) -> (i32, i32) {
    %c0_i32 = arith.constant 0 : i32
    %c0_i32_0 = arith.constant 0 : i32
    %c0_i32_1 = arith.constant 0 : i32
    return %c0_i32, %c0_i32_0 : i32, i32
  }
  func.func @transform_4(%arg0: i32, %arg1: i32, %arg2: memref<2xi32, #tpu.memory_space<smem>>, %arg3: memref<2xi32, #tpu.memory_space<smem>>) -> (i32, i32) {
    %c0_i32 = arith.constant 0 : i32
    %c0_i32_0 = arith.constant 0 : i32
    return %arg0, %c0_i32 : i32, i32
  }
}

</mosaic_0001>

<bundles_post_ra>
// kernel: tpu_custom_call.1
= control target key start
LH: loop header
LB: loop body
LE: loop exit
PB: predicated region body
PF: predicated region fallthrough
CT: control target
= control target key end

     0   :  { %s1360_s0 = inlined_call_operand.hbm [shape: s32[2], index: 0, kind: input, shape index: {}]   ;;  %s1361_s2 = inlined_call_operand.hbm [shape: bf16[16,16], index: 2, kind: input, shape index: {}]   ;;  %s1362_s3 = inlined_call_operand.vmem [shape: bf16[16,128], index: 3, kind: input, shape index: {}]   ;;  %s1363_s4 = inlined_call_operand.hbm [shape: bf16[16,16], index: 4, kind: input, shape index: {}]   ;;  %s1364_s5 = inlined_call_operand.vmem [shape: bf16[16,128], index: 5, kind: input, shape index: {}]   ;;  %s1365_s6 = inlined_call_operand.hbm [shape: f32[16,128], index: 6, kind: output, shape index: {}]   ;;  %s1366_s1 = inlined_call_operand.vmem [shape: s32[2], index: 1, kind: input, shape index: {}]  }
   0x1   :  { %s767_s23 = scalar_lea.hbm %s1360_s0, 16 }
   0x2   :  { %p768_p0 = scmp.ne.s32.totalorder %s1360_s0, %s767_s23  ;;  %p771_p1 = scmp.lt.u32.totalorder %s767_s23, %s1360_s0 }
   0x4   :  { %p773_p2 = pnand %p771_p1, %p768_p0 }
   0x6   :  { %776 = shalt.err (!%p773_p2)  }
   0x7   :  { %s963_s28 = smov [#allocation4]   ;;  %s13_s9 = sshll.u32 %s1366_s1, 4  ;;  %s14_s9 = int_to_ptr.vmem [resolvable:$true] %s13_s9 }
   0x8   :  { %12 = dma.hbm_to_smem %s1360_s0, 16, %s963_s28, [#allocation3] }
   0x9   :  { %s777_s10 = scalar_lea.vmem %s14_s9, 16  ;;  %p782_p4 = scmp.lt.s32.totalorder %s14_s9, %s14_s9 }
   0xa   :  { %p778_p3 = scmp.ne.s32.totalorder %s14_s9, %s777_s10  ;;  %p783_p5 = scmp.lt.s32.totalorder %s777_s10, %s777_s10 }
   0xc   :  { %p784_p6 = por %p783_p5, %p782_p4 }
   0xe   :  { %p785_p7 = pnand %p784_p6, %p778_p3 }
  0x10   :  { %788 = shalt.err (!%p785_p7)  }
  0x11   :  { %s964_s11 = smov [#allocation5]  }
  0x12   :  { %16 = dma.vmem_to_smem %s14_s9, 16, %s964_s11, [#allocation3] }
  0x13   :  { %913 = dma.done.wait [#allocation3], 32 }
  0x14   :  { %914 = vsyncadd [#allocation3], 4294967264 }
  0x15   :  { %18 = sfence }
  0x16   :  { %19 = vsyncpa [#allocation7], 0 }
  0x17   :  { %21 = vsyncpa [#allocation7 + $0x1], 0 }
  0x18   :  { %22 = vsyncpa [#allocation10], 0 }
  0x19   :  { %24 = vsyncpa [#allocation10 + $0x1], 0 }
  0x1a   :  { %25 = vsyncpa [#allocation8], 0 }
  0x1b   :  { %27 = vsyncpa [#allocation8 + $0x1], 0  ;;  %s1022_s0 = smov 0   ;;  %s1024_s1 = smov 0  }
  0x1c   :  { %s1026_s12 = smov 0   ;;  %s1028_s13 = smov 0  }
  0x1d   :  { %s1030_s14 = smov 0   ;;  %s1032_s15 = smov 0  }
  0x1e   :  { %s1034_s16 = smov 0   ;;  %s1036_s17 = smov 0  }
  0x1f   :  { %s1038_s18 = smov 0  }
  0x20 LB: > { %s1367_s19 = sadd.s32 4294967295, %s961_s18   ;;  %s45_s20 = sadd.s32 1, %s957_s17  ;;  %s961_s18 = sphi %s1038_s18, %s33_s18   ;;  %s957_s17 = sphi %s1036_s17, %s1408_s17   ;;  %s953_s16 = sphi %s1034_s16, %s1407_s16   ;;  %s949_s15 = sphi %s1032_s15, %s1406_s15   ;;  %s945_s14 = sphi %s1030_s14, %s1405_s14   ;;  %s941_s13 = sphi %s1028_s13, %s1404_s13   ;;  %s937_s12 = sphi %s1026_s12, %s1403_s12   ;;  %s933_s1 = sphi %s1024_s1, %s1402_s1   ;;  %s929_s0 = sphi %s1022_s0, %s1401_s0  }
  0x21   : > { %p47_p8 = scmp.ge.s32.totalorder %s45_s20, 2  ;;  %s49_s21 = sld [smem:[#allocation4 + %s957_s17]] }
  0x22   : > { %s50_s22 = sld [smem:[#allocation5 + %s957_s17]]  ;;  %p73_p9 = scmp.ne.s32.totalorder %s949_s15, %s945_s14 }
  0x23   : > { %s1410_s20 = smov (%p47_p8, %s45_s20), 0  ;;  %p74_p10 = scmp.eq.s32.totalorder %s961_s18, 0 }
  0x24   : > { %1375 = sst [smem:[#allocation20_spill]] %s1410_s20  ;;  %s1079_s26 = ssub.s32 %s957_s17, %s1410_s20 }
  0x25   : > { %s55_s24 = sld [smem:[#allocation4 + %s1410_s20]]  ;;  %p1083_p11 = por %p74_p10, %p73_p9 }
  0x26   : > { %s56_s25 = sld [smem:[#allocation5 + %s1410_s20]]  ;;  %p79_p13 = scmp.ne.s32.totalorder %s945_s14, %s941_s13 }
  0x27   : > { %p51_p12 = scmp.gt.s32.totalorder %s49_s21, 0  ;;  %p1090_p0 = scmp.eq.s32.totalorder %s1367_s19, 0 }
  0x28   : > { %p1370_p3 = scmp.lt.s32.totalorder %s961_s18, 2  ;;  %s1368_s30 = sand.u32 1, %s949_s15  }
  0x29   : > { %s1412_s21 = smov (!%p51_p12, %s49_s21), 0  ;;  %p1097_p2 = por %p1090_p0, %p79_p13 }
  0x2a   : > { %p53_p4 = scmp.lt.s32.totalorder %s50_s22, %s1412_s21  ;;  %p1107_p6 = pnand %p1370_p3, %p1083_p11 }
  0x2b   : > { %s1378_s29 = scalar_select %p1097_p2, 1, 0 }
  0x2c   : > { %p57_p5 = scmp.gt.s32.totalorder %s55_s24, 0  ;;  %s1414_s22 = smov (!%p53_p4, %s50_s22), %s1412_s21 }
  0x2d   : > { %s624_s8 = sshll.u32 %s1368_s30, 2  ;;  %s1380_s21 = sadd.s32 1, %s949_s15 }
  0x2e   : > { %s1416_s24 = smov (!%p57_p5, %s55_s24), 0  ;;  %s221_s13 = scalar_lea.vmem [#allocation6], %s624_s8 }
  0x2f   : > { %p59_p7 = scmp.lt.s32.totalorder %s56_s25, %s1416_s24  ;;  %s235_s19 = sshll.u32 %s221_s13, 4  ;;  %s1119_s19 = int_to_ptr.vmem [resolvable:$true] %s235_s19 }
  0x30   : > { %s660_s9 = scalar_select %p1083_p11, [#allocation4], [#allocation12] }
  0x31   : > { %s1418_s25 = smov (!%p59_p7, %s56_s25), %s1416_s24  ;;  %p628_p9 = scmp.ge.s32.totalorder %s961_s18, 1 }
  0x32   : > { %s661_s10 = scalar_select %p1083_p11, %s957_s17, 0 }
  0x33   : > { %s62_s11 = ssub.s32 %s1414_s22, %s1418_s25  ;;  %s1420_s9 = smov (!%p1370_p3, %s660_s9), [#allocation14] }
  0x34   : > { %s63_s23 = sor.u32 %s62_s11, %s1079_s26  ;;  %s1422_s10 = smov (!%p1370_p3, %s661_s10), 0 }
  0x35   : > { %p64_p8 = scmp.eq.s32.totalorder %s63_s23, 0  ;;  %s222_s24 = sld [smem:[%s1420_s9 + %s1422_s10]] }
  0x36   : > { %s662_s22 = scalar_select %p1083_p11, [#allocation5], [#allocation13] }
  0x37   : > { %s1126_s30 = scalar_select %p64_p8, %s949_s15, %s1380_s21  }
  0x38   : > { %s1424_s22 = smov (!%p1370_p3, %s662_s22), [#allocation15]  ;;  %p279_p12 = scmp.lt.s32.totalorder %s961_s18, 3 }
  0x39   : > { %1381 = sst [smem:[#allocation21_spill]] %s1126_s30  ;;  %s621_s27 = sadd.s32 4294967294, %s961_s18  }
  0x3a   : > { %s223_s23 = sld [smem:[%s1424_s22 + %s1422_s10]]  ;;  %p1136_p13 = pnand %p628_p9, %p279_p12 }
  0x3b   : > { %p224_p4 = scmp.gt.s32.totalorder %s222_s24, 0  ;;  %p128_p5 = scmp.eq.s32.totalorder %s1079_s26, 0 }
  0x3c   : > { %s1382_s25 = scalar_select %p1136_p13, 1, 0 }
  0x3d   : > { %s1426_s24 = smov (!%p224_p4, %s222_s24), 0  ;;  %s130_s8 = sadd.s32 1, %s937_s12 }
  0x3e   : > { %p137_p11 = scmp.ne.s32.totalorder %s937_s12, %s933_s1  ;;  %p1371_p8 = scmp.ne.s32.totalorder %s933_s1, %s929_s0 }
  0x3f   : > { %s1148_s9 = scalar_select %p128_p5, %s937_s12, %s130_s8  }
  0x40   : > { %p226_p7 = scmp.lt.s32.totalorder %s223_s23, %s1426_s24  ;;  %p1152_p1 = por %p137_p11, %p74_p10 }
  0x41   : > { %p1161_p9 = por %p1371_p8, %p1090_p0  ;;  %s1385_s13 = sadd.s32 4294967295, %s961_s18  }
  0x42   : > { %s1428_s23 = smov (!%p226_p7, %s223_s23), %s1426_s24  ;;  %p188_p12 = scmp.eq.s32.totalorder %s1385_s13, 1 }
  0x43   : > { %s1383_s10 = scalar_select %p1152_p1, 1, 0 }
  0x44   : > { %s1384_s26 = scalar_select %p1161_p9, 1, 0 }
  0x45   : > { %s231_s11 = sadd.s32 %s957_s17, %s1428_s23  ;;  %p1168_p4 = scmp.eq.s32.totalorder %s621_s27, 1 }
  0x46   : > { %s625_s21 = sshll.u32 %s231_s11, 6  ;;  %p1177_p10 = por %p188_p12, %p137_p11 }
  0x47   : > { %s1175_s20 = scalar_lea.hbm %s1361_s2, %s625_s21  ;;  %s1388_s23 = sand.u32 1, %s949_s15  }
  0x48   : > { %s1387_s28 = scalar_select %p1177_p10, 1, 0 }
  0x49   : > { %s218_s13 = scalar_lea.sflag [#allocation7], %s1388_s23  ;;  %s789_s11 = scalar_lea.hbm %s1175_s20, 64 }
  0x4a   : > { %p790_p0 = scmp.ne.s32.totalorder %s1175_s20, %s789_s11  ;;  %p791_p5 = pneg %p1107_p6 }
  0x4b   : > { %s794_s24 = scalar_lea.hbm %s1361_s2, 128  ;;  %p795_p11 = scmp.lt.u32.totalorder %s1175_s20, %s1361_s2 }
  0x4c   : > { %p792_p7 = pnand %p791_p5, %p790_p0  ;;  %p796_p12 = scmp.lt.u32.totalorder %s794_s24, %s789_s11 }
  0x4d   : > { %p798_p10 = scmp.lt.u32.totalorder %s789_s11, %s1175_s20 }
  0x4e   : > { %p793_p3 = pneg %p792_p7  ;;  %p797_p8 = por %p796_p12, %p795_p11 }
  0x50   : > { %p799_p9 = por %p798_p10, %p797_p8 }
  0x52   : > { %p800_p2 = pnand %p799_p9, %p793_p3 }
  0x54   : > { %803 = shalt.err (!%p800_p2)
}
  0x55   : > { %s804_s23 = scalar_lea.vmem %s1119_s19, 64  ;;  %s965_s27 = smov [#allocation6]  }
  0x56   : > { %p805_p0 = scmp.ne.s32.totalorder %s1119_s19, %s804_s23  ;;  %s809_s21 = sshll.u32 %s965_s27, 4  ;;  %s810_s21 = int_to_ptr.vmem [resolvable:$false] %s809_s21 }
  0x57   : > { %s811_s30 = scalar_lea.vmem %s810_s21, 128  ;;  %p812_p1 = scmp.lt.s32.totalorder %s1119_s19, %s810_s21 }
  0x58   : > { %p807_p7 = pnand %p805_p0, %p791_p5  ;;  %p813_p11 = scmp.lt.s32.totalorder %s811_s30, %s804_s23 }
  0x5a   : > { %p808_p13 = pneg %p807_p7  ;;  %p814_p12 = por %p813_p11, %p812_p1 }
  0x5c   : > { %p815_p8 = pnand %p814_p12, %p808_p13 }
  0x5e   : > { %818 = shalt.err (!%p815_p8)
}
  0x5f   : > { %677 = dma.hbm_to_vmem [thread:$0]  (!%p1107_p6), %s1175_s20, 64, %s1119_s19, %s218_s13  }
  0x60   : > { %p1389_p2 = scmp.ne.s32.totalorder %s933_s1, %s929_s0  ;;  %s263_s24 = sand.u32 1, %s937_s12  }
  0x61   : > { %s626_s8 = sshll.u32 %s263_s24, 2  ;;  %s627_s23 = sshll.u32 %s957_s17, 6 }
  0x62   : > { %p1213_p3 = por %p1168_p4, %p1389_p2  ;;  %s1222_s21 = scalar_lea.hbm %s1363_s4, %s627_s23 }
  0x63   : > { %s267_s30 = scalar_lea.vmem [#allocation9], %s626_s8  ;;  %p1391_p1 = scmp.ne.s32.totalorder %s1383_s10, 0 }
  0x64   : > { %s274_s19 = sshll.u32 %s267_s30, 4  ;;  %p1392_p6 = scmp.lt.s32.totalorder %s961_s18, 2  ;;  %s1224_s19 = int_to_ptr.vmem [resolvable:$true] %s274_s19 }
  0x65   : > { %s264_s22 = scalar_lea.sflag [#allocation10], %s263_s24  ;;  %s819_s13 = scalar_lea.hbm %s1222_s21, 64 }
  0x66   : > { %p1230_p13 = pnand %p1392_p6, %p1391_p1  ;;  %p820_p9 = scmp.ne.s32.totalorder %s1222_s21, %s819_s13 }
  0x67   : > { %s824_s10 = scalar_lea.hbm %s1363_s4, 128  ;;  %p825_p0 = scmp.lt.u32.totalorder %s1222_s21, %s1363_s4 }
  0x68   : > { %p821_p4 = pneg %p1230_p13  ;;  %p826_p7 = scmp.lt.u32.totalorder %s824_s10, %s819_s13 }
  0x69   : > { %p828_p12 = scmp.lt.u32.totalorder %s819_s13, %s1222_s21 }
  0x6a   : > { %p822_p10 = pnand %p821_p4, %p820_p9  ;;  %p827_p11 = por %p826_p7, %p825_p0 }
  0x6c   : > { %p823_p5 = pneg %p822_p10  ;;  %p829_p8 = por %p828_p12, %p827_p11 }
  0x6e   : > { %p830_p2 = pnand %p829_p8, %p823_p5 }
  0x70   : > { %833 = shalt.err (!%p830_p2)
}
  0x71   : > { %s834_s24 = scalar_lea.vmem %s1224_s19, 64  ;;  %s966_s30 = smov [#allocation9]  }
  0x72   : > { %p835_p1 = scmp.ne.s32.totalorder %s1224_s19, %s834_s24  ;;  %s839_s8 = sshll.u32 %s966_s30, 4  ;;  %s840_s8 = int_to_ptr.vmem [resolvable:$false] %s839_s8 }
  0x73   : > { %s841_s23 = scalar_lea.vmem %s840_s8, 128  ;;  %p842_p10 = scmp.lt.s32.totalorder %s1224_s19, %s840_s8 }
  0x74   : > { %p837_p6 = pnand %p835_p1, %p821_p4  ;;  %p843_p0 = scmp.lt.s32.totalorder %s841_s23, %s834_s24 }
  0x76   : > { %p838_p9 = pneg %p837_p6  ;;  %p844_p7 = por %p843_p0, %p842_p10 }
  0x78   : > { %p845_p11 = pnand %p844_p7, %p838_p9 }
  0x7a   : > { %848 = shalt.err (!%p845_p11)
}
  0x7b   : > { %680 = dma.hbm_to_vmem [thread:$0]  (!%p1230_p13), %s1222_s21, 64, %s1224_s19, %s264_s22  }
  0x7c   : > { %p1394_p5 = scmp.ne.s32.totalorder %s1382_s25, 0 }
  0x7d   : > { %s285_s13 = sand.u32 (!%p1394_p5), 1, %s945_s14   ;;  %p1395_p4 = scmp.ne.s32.totalorder (!%p1394_p5), %s1378_s29, 0 }
  0x7e   : > { %283 = sbr.rel (%p1394_p5) target bundleno = 607 (0x25f), region = 36  ;;  %s1262_s10 = sshll.u32 (!%p1394_p5), %s285_s13, 2 }
  0x7f   : > { %s286_s7 = scalar_lea.sflag (!%p1394_p5), [#allocation7], %s285_s13  ;;  %s289_s27 = scalar_lea.vmem (!%p1394_p5), [#allocation6], %s1262_s10 }
  0x85   : > { %916 = dma.done.wait (%p1395_p4), %s286_s7, 64  }
  0x86   : > { %918 = vsyncadd (%p1395_p4), %s286_s7, 4294967232  ;;  %s1270_s20 = sand.u32 1, %s933_s1   ;;  %p1396_p13 = scmp.ne.s32.totalorder %s1384_s26, 0 }
  0x87   : > { %s630_s25 = sshll.u32 %s1270_s20, 2  ;;  %s295_s21 = scalar_lea.sflag [#allocation10], %s1270_s20 }
  0x88   : > { %s1274_s19 = scalar_lea.vmem [#allocation9], %s630_s25 }
  0x89   : > { %920 = dma.done.wait (%p1396_p13), %s295_s21, 64  }
  0x8a   : > { %922 = vsyncadd (%p1396_p13), %s295_s21, 4294967232  ;;  %s631_s29 = sshll.u32 %s1270_s20, 3  ;;  %s345_s22 = sld [smem:[#allocation4 + %s953_s16]]  ;;  %v967_v0 = vmov 0.0  }
  0x8b   : > { %368 = vst [vmem:[#allocation2] sm:$0xff] %v967_v0  ;;  %s369_s24 = sld [smem:[#allocation4 + %s953_s16]]  ;;  %s1288_s21 = scalar_lea.vmem [#allocation11], %s631_s29 }
  0x8c   : > { %s371_s30 = sld [smem:[#allocation5 + %s953_s16]] }
  0x8d   : > { %s346_s8 = sld [smem:[#allocation5 + %s953_s16]] }
  0x90   : > { %p347_p12 = scmp.gt.s32.totalorder %s345_s22, 0 }
  0x91   : > { %p634_p8 = scmp.le.s32.totalorder %s369_s24, 0 }
  0x92   : > { %p635_p2 = scmp.ge.s32.totalorder %s371_s30, 0  ;;  %s1430_s22 = smov (!%p347_p12, %s345_s22), 0 }
  0x93   : > { %p349_p6 = scmp.lt.s32.totalorder %s346_s8, %s1430_s22 }
  0x94   : > { %p373_p1 = pnand %p635_p2, %p634_p8 }
  0x95   : > { %s1432_s8 = smov (!%p349_p6, %s346_s8), %s1430_s22  ;;  %v968_v2 = vmov (!%p373_p1), 0.0   ;;  %vm969_vm0 = vmmov (!%p373_p1), 0   ;;  %v378_v3 = vld [vmem:[%s289_s27] sm:$0xf] (!%p373_p1)  ;;  %vm387_vm1 = vcmask (!%p373_p1), 130048   ;;  %v377_v4 = vld [vmem:[#allocation2] sm:$0xff] (!%p373_p1) }
  0x96   : > { %s632_s26 = sshll.u32 %s1432_s8, 1  ;;  %376 = sbr.rel (%p373_p1) target bundleno = 375 (0x177), region = 52  ;;  %648 = vmatprep.subr.bf16.mxu0 (!%p373_p1), %v968_v2  ;;  %650 = vmatprep.mubr.msk.bf16.mxu0 (!%p373_p1), %vm969_vm0, %v968_v2 }
  0x97   : > { %p352_p9 = scmp.lt.s32.totalorder %s632_s26, 1 }
  0x99   : > { %s1434_s26 = smov (!%p352_p9, %s632_s26), 1 }
  0x9a   : > { %s633_s23 = sshll.u32 %s1434_s26, 2 }
  0x9b   : > { %s355_s25 = scalar_lea.vmem %s1362_s3, %s633_s23 }
  0x9c   : > { %v765_v1 = vld [vmem:[%s355_s25] sm:$0xff] (!%p373_p1)  }
  0x9d   : > { %649 = vmatpush3.bf16.msra.mxu0 %v765_v1 }
  0xa0   : > { %651 = vmatmul.mubr.msk.bf16.vlgmr.msra.gmra.mrb[0].mxu0 %vm387_vm1, %v378_v3 }
 0x173   : > { %v425_v5 = vpop.f32.mrb[0].mxu0 }
 0x174   : > { %v431_v6 = vadd.f32 %v425_v5, %v377_v4  ;;  %v652_v7 = vpop.f32.mrb[1].mxu0 }
 0x175   : > { %v428_v8 = vpop.f32.mrb[2].mxu0 }
 0x176   : > { %432 = vst [vmem:[#allocation2] sm:$0xff] %v431_v6  ;;  %v653_v9 = vpop.f32.mrb[3].mxu0 }
 0x177 PF: > { %654 = vmatprep.subr.bf16.mxu0 %v967_v0  ;;  %v766_v10 = vld [vmem:[%s1364_s5] sm:$0xff]   ;;  %vm970_vm2 = vmmov 0   ;;  %vm445_vm3 = vcmask 130048   ;;  %s641_s10 = sshll.u32 %s953_s16, 7  ;;  %s506_s27 = sshll.u32 %s1288_s21, 4  ;;  %s1303_s27 = int_to_ptr.vmem [resolvable:$true] %s506_s27 }
 0x178   : > { %656 = vmatprep.mubr.msk.bf16.mxu0 %vm970_vm2, %v967_v0  ;;  %655 = vmatpush3.bf16.msra.mxu0 %v766_v10  ;;  %v436_v11 = vld [vmem:[%s1274_s19] sm:$0xf]  ;;  %s1301_s8 = scalar_lea.hbm %s1365_s6, %s641_s10  ;;  %s493_s19 = scalar_lea.sflag [#allocation8], %s1270_s20 }
 0x179   : > { %s849_s26 = scalar_lea.vmem %s1303_s27, 128  ;;  %p1397_p0 = scmp.ne.s32.totalorder %s1387_s28, 0 }
 0x17a   : > { %p850_p10 = scmp.ne.s32.totalorder %s1303_s27, %s849_s26  ;;  %s971_s16 = smov [#allocation11]  }
 0x17b   : > { %657 = vmatmul.mubr.msk.bf16.vlgmr.msra.gmra.mrb[0].mxu0 %vm445_vm3, %v436_v11  ;;  %s853_s23 = sshll.u32 %s971_s16, 4  ;;  %s854_s23 = int_to_ptr.vmem [resolvable:$false] %s853_s23 }
 0x17c   : > { %p851_p7 = pnand %p850_p10, %p1397_p0  ;;  %s855_s13 = scalar_lea.vmem %s854_s23, 256 }
 0x17d   : > { %v489_v12 = vld [vmem:[#allocation2] sm:$0xff]  ;;  %p856_p5 = scmp.lt.s32.totalorder %s1303_s27, %s854_s23  ;;  %p857_p4 = scmp.lt.s32.totalorder %s855_s13, %s849_s26 }
 0x17e   : > { %p852_p11 = pneg %p851_p7 }
 0x17f   : > { %p858_p13 = por %p857_p4, %p856_p5 }
 0x181   : > { %p859_p12 = pnand %p858_p13, %p852_p11 }
 0x24e   : > { %v483_v13 = vpop.f32.mrb[0].mxu0 }
 0x24f   : > { %v490_v14 = vmul.f32 %v489_v12, %v483_v13  ;;  %v658_v15 = vpop.f32.mrb[1].mxu0 }
 0x250   : > { %v486_v16 = vpop.f32.mrb[2].mxu0 }
 0x251   : > { %491 = vst [vmem:[%s1288_s21] sm:$0xff] %v490_v14  ;;  %v659_v17 = vpop.f32.mrb[3].mxu0 }
 0x252   : > { %862 = shalt.err (!%p859_p12)
}
 0x253   : > { %s863_s20 = scalar_lea.hbm %s1301_s8, 128  ;;  %s867_s21 = scalar_lea.hbm %s1365_s6, 256 }
 0x254   : > { %p864_p8 = scmp.ne.s32.totalorder %s1301_s8, %s863_s20  ;;  %p868_p6 = scmp.lt.u32.totalorder %s1301_s8, %s1365_s6 }
 0x255   : > { %p869_p9 = scmp.lt.u32.totalorder %s867_s21, %s863_s20  ;;  %p871_p7 = scmp.lt.u32.totalorder %s863_s20, %s1301_s8 }
 0x256   : > { %p865_p2 = pnand %p864_p8, %p1397_p0 }
 0x257   : > { %p870_p10 = por %p869_p9, %p868_p6 }
 0x258   : > { %p866_p1 = pneg %p865_p2 }
 0x259   : > { %p872_p11 = por %p871_p7, %p870_p10 }
 0x25b   : > { %p873_p5 = pnand %p872_p11, %p866_p1 }
 0x25d   : > { %876 = shalt.err (!%p873_p5)
}
 0x25e   : > { %668 = dma.vmem_to_hbm [thread:$0]  (%p1397_p0), %s1303_s27, 128, %s1301_s8, %s493_s19  }
 0x25f PF: > { %s518_s10 = sand.u32 1, %s929_s0   ;;  %p1398_p4 = scmp.ge.s32.totalorder %s961_s18, 2 }
 0x260   : > { %s519_s24 = scalar_lea.sflag [#allocation8], %s518_s10 }
 0x261   : > { %p682_p13 = pnand %p1398_p4, %p1213_p3 }
 0x263   : > { %924 = dma.done.wait (!%p682_p13), %s519_s24, 128  }
 0x264   : > { %926 = vsyncadd (!%p682_p13), %s519_s24, 4294967168  ;;  %s33_s18 = sadd.s32 1, %s961_s18   ;;  %s1399_s28 = sld [smem:[#allocation21_spill]] }
 0x265   : > { %p30_p12 = scmp.ge.s32.totalorder %s33_s18, 4   ;;  %s1400_s27 = sld [smem:[#allocation20_spill]] }
 0x266   : > { %s1401_s0 = smov %s933_s1  ;;  %s1402_s1 = smov %s937_s12 }
 0x267   : > { %s1403_s12 = smov %s1148_s9  ;;  %s1404_s13 = smov %s945_s14 }
 0x268   : > { %s1405_s14 = smov %s949_s15  ;;  %s1407_s16 = smov %s957_s17 }
 0x269   :  { %32 = sbr.rel (!%p30_p12) target bundleno = 32 (0x20), region = 109 }
 0x26a   : > { %s1406_s15 = smov %s1399_s28 }
 0x26b   : > { %s1408_s17 = smov %s1400_s27 }
 0x270   :  { %524 = vsyncpa [#allocation7], 1 }
 0x271   :  { %526 = vsyncpa [#allocation7 + $0x1], 1 }
 0x272   :  { %527 = vsyncpa [#allocation10], 1 }
 0x273   :  { %529 = vsyncpa [#allocation10 + $0x1], 1 }
 0x274   :  { %530 = vsyncpa [#allocation8], 1 }
 0x275   :  { %532 = vsyncpa [#allocation8 + $0x1], 1 }

</bundles_post_ra>
